<compile_context>
chip_gen: v7x
topology: tpu7x:2x2x1
jax: 0.10.0
libtpu: 0.0.40
codegen_flags: <defaults>
</compile_context>

<pallas_src>
import functools

import jax
import jax.numpy as jnp
import numpy as np
from jax import lax
from jax.experimental import pallas as pl
from jax.experimental.pallas import tpu as pltpu


def _focal_loss_kernel(pred_ref, target_ref, out_ref, *,
                       alpha, gamma, n_total, lane_tile):
    # pred: (C, TL) -- classes on sublanes, batch columns on lanes.
    pred = pred_ref[...].astype(jnp.float32)
    tgt = target_ref[...].astype(jnp.int32)         # (1, TL), widened from int8
    c, tl = pred.shape

    # Numerically stable log-softmax pieces along the class (sublane) axis.
    m = jnp.max(pred, axis=0, keepdims=True)                          # (1, TL)
    shifted = pred - m                                                # (C, TL)
    lse = jnp.log(jnp.sum(jnp.exp(shifted), axis=0, keepdims=True))   # (1, TL)

    # Single boolean one-hot (reused); gather the target-class logit via select+reduce.
    cls = lax.broadcasted_iota(jnp.int32, (c, tl), 0)
    sel = cls == tgt                                                  # (C, TL) bool
    shifted_t = jnp.sum(jnp.where(sel, shifted, 0.0),
                        axis=0, keepdims=True)                        # (1, TL)

    # alpha gather: compile-time constants + short where-chain on the (1, TL) targets
    # (intended for the small-C case of the module; no (C, TL) work, no alpha operand).
    alpha_t = jnp.full((1, tl), alpha[0], dtype=jnp.float32)
    for k in range(1, c):
        alpha_t = jnp.where(tgt == k, jnp.float32(alpha[k]), alpha_t)

    log_pt_t = shifted_t - lse                                        # (1, TL)
    pt_t = jnp.exp(log_pt_t)
    # gamma is a Python int -> integer_pow -> VPU multiplies, no EUP pow.
    focal = alpha_t * ((1.0 - pt_t) ** gamma) * log_pt_t              # (1, TL)

    # Mask columns past the true batch size (last tile may be padded).
    col = (pl.program_id(0) * lane_tile
           + lax.broadcasted_iota(jnp.int32, (1, tl), 1))
    focal = jnp.where(col < n_total, focal, 0.0)

    partial = -jnp.sum(focal)

    # Lane-dense (8, 128) output slab (full, unmasked vector store): partial sum at
    # [0, 0], zeros elsewhere; the wrapper reduces over the (few) tiles.
    idx = (lax.broadcasted_iota(jnp.int32, (8, 128), 0)
           + lax.broadcasted_iota(jnp.int32, (8, 128), 1))
    out_ref[...] = jnp.where(idx == 0, partial, 0.0).astype(out_ref.dtype)


def _round_up(x, m):
    return ((x + m - 1) // m) * m


def _pick_lane_tile(n, c, pred_itemsize, tgt_itemsize):
    """Largest power-of-two lane tile (multiple of 128) fitting a v7x-safe VMEM budget."""
    if n <= 128:
        return n  # block == full array extent (always legal)
    # Per-lane-column VMEM: double-buffered pred + target tiles plus ~4 f32 full-tile
    # temporaries and a handful of (1, TL) f32 vectors.  Budget kept ~24 MiB so the
    # kernel is comfortable on v7x's 64 MiB VMEM/TC (and trivially on v5e/v6e's 128 MiB).
    budget = 24 * 1024 * 1024
    per_col = c * (2 * pred_itemsize + 16) + 2 * tgt_itemsize + 64
    cap = min(max(budget // per_col, 128), 131072)
    n_pad = _round_up(n, 128)
    tile = 128
    while tile * 2 <= cap and tile * 2 <= n_pad:
        tile *= 2
    return tile


def focal_loss(pred, target, alpha, gamma=2):
    """pred: (N, C) float logits, target: (N,) int, alpha: (C,) concrete floats -> scalar f32."""
    n, c = pred.shape
    # Keep gamma an integer when possible so pow lowers to VPU multiplies.
    if float(gamma) == int(gamma):
        gamma = int(gamma)

    # alpha is a fixed module buffer -> bake as compile-time constants (must be concrete).
    alpha_vals = tuple(float(a) for a in np.asarray(jax.device_get(alpha)))
    assert len(alpha_vals) == c

    # Lane-dense batch axis.  allow_input_fusion below lets XLA fuse this transpose into
    # the pallas_call operand instead of materializing (C, N) via an HBM round trip.
    pred_t = jnp.transpose(pred)                                      # (C, N)

    # Narrow the target stream: int8 when all class ids fit (C <= 127).
    tgt_dtype = jnp.int8 if c <= 127 else (jnp.int16 if c <= 32767 else jnp.int32)
    target2d = target.astype(tgt_dtype).reshape(1, n)                 # (1, N)

    pred_isz = jnp.dtype(pred.dtype).itemsize
    tgt_isz = jnp.dtype(tgt_dtype).itemsize
    lane_tile = _pick_lane_tile(n, c, pred_isz, tgt_isz)
    num_tiles = pl.cdiv(n, lane_tile)

    kernel = functools.partial(_focal_loss_kernel, alpha=alpha_vals, gamma=gamma,
                               n_total=n, lane_tile=lane_tile)

    cost = pl.CostEstimate(
        flops=int(n * (8 * c + 24)),
        transcendentals=int(n * (c + 2)),            # exp per class + log + final exp
        bytes_accessed=int(n * c * pred_isz + n * tgt_isz + num_tiles * 8 * 128 * 4),
    )

    partials = pl.pallas_call(
        kernel,
        out_shape=jax.ShapeDtypeStruct((num_tiles * 8, 128), jnp.float32),
        grid_spec=pltpu.PrefetchScalarGridSpec(
            num_scalar_prefetch=0,
            grid=(num_tiles,),
            in_specs=[
                pl.BlockSpec((c, lane_tile), lambda i: (0, i)),   # pred^T tile
                pl.BlockSpec((1, lane_tile), lambda i: (0, i)),   # target tile (int8)
            ],
            out_specs=pl.BlockSpec((8, 128), lambda i: (i, 0)),   # per-tile partials
        ),
        compiler_params=pltpu.CompilerParams(
            dimension_semantics=("parallel",),       # independent partial sums (v7x megacore)
            vmem_limit_bytes=48 * 1024 * 1024,       # within v7x's 64 MiB physical VMEM
            allow_input_fusion=[True, True],         # fuse transpose / int8 cast into the call
        ),
        cost_estimate=cost,
    )(pred_t, target2d)

    return jnp.sum(partials)


def focal_loss_ref(pred, target, alpha, gamma=2):
    log_pt = jax.nn.log_softmax(pred.astype(jnp.float32), axis=1)
    pt = jnp.exp(log_pt)
    a = alpha[target][:, None]
    w = a * (1.0 - pt) ** gamma * log_pt
    picked = jnp.take_along_axis(w, target[:, None], axis=1)
    return -jnp.sum(picked)


if __name__ == "__main__":
    key = jax.random.PRNGKey(0)
    alpha = jnp.array([1.0 / 8000.0, 1.0 / 4000.0], dtype=jnp.float32)

    # Primary small case matching the module: binary logits, alpha of length 2.
    k1, k2 = jax.random.split(key)
    N, C = 16, 2
    pred = jax.random.normal(k1, (N, C), dtype=jnp.float32)
    target = jax.random.randint(k2, (N,), 0, C, dtype=jnp.int32)
    out = jax.block_until_ready(focal_loss(pred, target, alpha, gamma=2))
    ref = jax.block_until_ready(focal_loss_ref(pred, target, alpha, gamma=2))
    np.testing.assert_allclose(np.asarray(out), np.asarray(ref), rtol=1e-5, atol=1e-6)

    # Multi-tile + padded-last-tile path (N not a multiple of the lane tile).
    k3, k4 = jax.random.split(k1)
    N2 = 300
    pred2 = jax.random.normal(k3, (N2, C), dtype=jnp.float32)
    target2 = jax.random.randint(k4, (N2,), 0, C, dtype=jnp.int32)
    out2 = jax.block_until_ready(focal_loss(pred2, target2, alpha, gamma=2))
    ref2 = jax.block_until_ready(focal_loss_ref(pred2, target2, alpha, gamma=2))
    np.testing.assert_allclose(np.asarray(out2), np.asarray(ref2), rtol=1e-5, atol=1e-6)

    # Larger batch exercising the enlarged lane tiles (still only a couple of tiles).
    k5, k6 = jax.random.split(k3)
    N3 = 5000
    pred3 = jax.random.normal(k5, (N3, C), dtype=jnp.float32)
    target3 = jax.random.randint(k6, (N3,), 0, C, dtype=jnp.int32)
    out3 = jax.block_until_ready(focal_loss(pred3, target3, alpha, gamma=2))
    ref3 = jax.block_until_ready(focal_loss_ref(pred3, target3, alpha, gamma=2))
    np.testing.assert_allclose(np.asarray(out3), np.asarray(ref3), rtol=1e-4, atol=1e-6)

    print("KERNEL_OK")
</pallas_src>

<mosaic_0001>
module attributes {stable_mosaic.version = 11 : i64} {
  func.func @_focal_loss_kernel(%arg0: i32, %arg1: memref<2x16xf32, #tpu.memory_space<vmem>>, %arg2: memref<1x16xi8, #tpu.memory_space<vmem>>, %arg3: memref<8x128xf32, #tpu.memory_space<vmem>>) attributes {dimension_semantics = [#tpu.dimension_semantics<parallel>], iteration_bounds = array<i64: 1>, scalar_prefetch = 0 : i64, scratch_operands = 0 : i64, tpu.core_type = #tpu.core_type<tc>, window_params = [{transform_indices = @transform_0, window_bounds = array<i64: 2, 16>}, {transform_indices = @transform_1, window_bounds = array<i64: 1, 16>}, {transform_indices = @transform_2, window_bounds = array<i64: 8, 128>}]} {
    %c0 = arith.constant 0 : index
    %c0_0 = arith.constant 0 : index
    %0 = vector.load %arg1[%c0, %c0_0] : memref<2x16xf32, #tpu.memory_space<vmem>>, vector<2x16xf32>
    %c0_1 = arith.constant 0 : index
    %c0_2 = arith.constant 0 : index
    %1 = vector.load %arg2[%c0_1, %c0_2] : memref<1x16xi8, #tpu.memory_space<vmem>>, vector<1x16xi8>
    %2 = arith.extsi %1 : vector<1x16xi8> to vector<1x16xi32>
    %cst = arith.constant dense<0xFF800000> : vector<16xf32>
    %3 = vector.multi_reduction <maximumf>, %0, %cst [0] : vector<2x16xf32> to vector<16xf32>
    %4 = vector.shape_cast %3 : vector<16xf32> to vector<1x16xf32>
    %5 = vector.broadcast %4 : vector<1x16xf32> to vector<2x16xf32>
    %6 = arith.subf %0, %5 : vector<2x16xf32>
    %7 = math.exp %6 : vector<2x16xf32>
    %cst_3 = arith.constant dense<0.000000e+00> : vector<16xf32>
    %8 = vector.multi_reduction <add>, %7, %cst_3 [0] : vector<2x16xf32> to vector<16xf32>
    %9 = vector.shape_cast %8 : vector<16xf32> to vector<1x16xf32>
    %10 = math.log %9 : vector<1x16xf32>
    %11 = tpu.iota {dimensions = array<i32: 0>} : vector<2x16xi32>
    %12 = vector.broadcast %2 : vector<1x16xi32> to vector<2x16xi32>
    %13 = arith.cmpi eq, %11, %12 : vector<2x16xi32>
    %cst_4 = arith.constant 0.000000e+00 : f32
    %14 = vector.broadcast %cst_4 : f32 to vector<2x16xf32>
    %15 = arith.select %13, %6, %14 : vector<2x16xi1>, vector<2x16xf32>
    %cst_5 = arith.constant dense<0.000000e+00> : vector<16xf32>
    %16 = vector.multi_reduction <add>, %15, %cst_5 [0] : vector<2x16xf32> to vector<16xf32>
    %17 = vector.shape_cast %16 : vector<16xf32> to vector<1x16xf32>
    %cst_6 = arith.constant 1.250000e-04 : f32
    %18 = vector.broadcast %cst_6 : f32 to vector<1x16xf32>
    %c1_i32 = arith.constant 1 : i32
    %19 = vector.broadcast %c1_i32 : i32 to vector<1x16xi32>
    %20 = arith.cmpi eq, %2, %19 : vector<1x16xi32>
    %cst_7 = arith.constant 2.500000e-04 : f32
    %21 = vector.broadcast %cst_7 : f32 to vector<1x16xf32>
    %22 = arith.select %20, %21, %18 : vector<1x16xi1>, vector<1x16xf32>
    %23 = arith.subf %17, %10 : vector<1x16xf32>
    %24 = math.exp %23 : vector<1x16xf32>
    %cst_8 = arith.constant 1.000000e+00 : f32
    %25 = vector.broadcast %cst_8 : f32 to vector<1x16xf32>
    %26 = arith.subf %25, %24 : vector<1x16xf32>
    %27 = arith.mulf %26, %26 : vector<1x16xf32>
    %28 = arith.mulf %22, %27 : vector<1x16xf32>
    %29 = arith.mulf %28, %23 : vector<1x16xf32>
    %c16_i32 = arith.constant 16 : i32
    %30 = arith.muli %arg0, %c16_i32 : i32
    %31 = tpu.iota {dimensions = array<i32: 1>} : vector<1x16xi32>
    %32 = vector.broadcast %30 : i32 to vector<1x16xi32>
    %33 = arith.addi %32, %31 : vector<1x16xi32>
    %c16_i32_9 = arith.constant 16 : i32
    %34 = vector.broadcast %c16_i32_9 : i32 to vector<1x16xi32>
    %35 = arith.cmpi slt, %33, %34 : vector<1x16xi32>
    %cst_10 = arith.constant 0.000000e+00 : f32
    %36 = vector.broadcast %cst_10 : f32 to vector<1x16xf32>
    %37 = arith.select %35, %29, %36 : vector<1x16xi1>, vector<1x16xf32>
    %38 = vector.shape_cast %37 : vector<1x16xf32> to vector<1x1x16xf32>
    %cst_11 = arith.constant dense<0.000000e+00> : vector<1xf32>
    %39 = vector.multi_reduction <add>, %38, %cst_11 [1, 2] : vector<1x1x16xf32> to vector<1xf32>
    %40 = vector.shape_cast %39 : vector<1xf32> to vector<1x1x1xf32>
    %41 = vector.extract %40[0, 0, 0] : f32 from vector<1x1x1xf32>
    %cst_12 = arith.constant 0.000000e+00 : f32
    %42 = arith.subf %cst_12, %41 : f32
    %43 = tpu.iota {dimensions = array<i32: 0>} : vector<8x128xi32>
    %44 = tpu.iota {dimensions = array<i32: 1>} : vector<8x128xi32>
    %45 = arith.addi %43, %44 : vector<8x128xi32>
    %c0_i32 = arith.constant 0 : i32
    %46 = vector.broadcast %c0_i32 : i32 to vector<8x128xi32>
    %47 = arith.cmpi eq, %45, %46 : vector<8x128xi32>
    %cst_13 = arith.constant 0.000000e+00 : f32
    %48 = vector.broadcast %42 : f32 to vector<8x128xf32>
    %49 = vector.broadcast %cst_13 : f32 to vector<8x128xf32>
    %50 = arith.select %47, %48, %49 : vector<8x128xi1>, vector<8x128xf32>
    %c0_14 = arith.constant 0 : index
    %c0_15 = arith.constant 0 : index
    %51 = vector.load %arg3[%c0_14, %c0_15] : memref<8x128xf32, #tpu.memory_space<vmem>>, vector<8x128xf32>
    tpu.vector_store %arg3[%c0_14, %c0_15], %50 {strides = array<i32>} : memref<8x128xf32, #tpu.memory_space<vmem>>, vector<8x128xf32>,
    return
  }
  func.func @transform_0(%arg0: i32) -> (i32, i32) {
    %c0_i32 = arith.constant 0 : i32
    %c0_i32_0 = arith.constant 0 : i32
    return %c0_i32, %arg0 : i32, i32
  }
  func.func @transform_1(%arg0: i32) -> (i32, i32) {
    %c0_i32 = arith.constant 0 : i32
    %c0_i32_0 = arith.constant 0 : i32
    return %c0_i32, %arg0 : i32, i32
  }
  func.func @transform_2(%arg0: i32) -> (i32, i32) {
    %c0_i32 = arith.constant 0 : i32
    %c0_i32_0 = arith.constant 0 : i32
    return %arg0, %c0_i32 : i32, i32
  }
}

</mosaic_0001>

<bundles_post_ra>
// kernel: tpu_custom_call.1
= control target key start
LH: loop header
LB: loop body
LE: loop exit
PB: predicated region body
PF: predicated region fallthrough
CT: control target
= control target key end

     0   :  { %7 = vsyncpa [#allocation3], 0  ;;  %s217_s0 = inlined_call_operand.hbm [shape: f32[2,16], index: 0, kind: input, shape index: {}]   ;;  %s218_s1 = inlined_call_operand.vmem [shape: s8[1,16], index: 1, kind: input, shape index: {}]   ;;  %s219_s2 = inlined_call_operand.hbm [shape: f32[8,128], index: 2, kind: output, shape index: {}]  }
   0x1   :  { %8 = vsyncpa [#allocation4], 0  ;;  %s169_s9 = smov [#allocation2]   ;;  %s121_s13 = scalar_lea.hbm %s217_s0, 32 }
   0x2   :  { %s15_s10 = sshll.u32 %s169_s9, 4  ;;  %p122_p0 = scmp.ne.s32.totalorder %s217_s0, %s121_s13  ;;  %s16_s10 = int_to_ptr.vmem [resolvable:$true] %s15_s10 }
   0x3   :  { %p125_p1 = scmp.lt.u32.totalorder %s121_s13, %s217_s0 }
   0x5   :  { %p127_p2 = pnand %p125_p1, %p122_p0 }
   0x7   :  { %130 = shalt.err (!%p127_p2)
}
   0x8   :  { %s131_s18 = scalar_lea.vmem %s16_s10, 32  ;;  %p136_p4 = scmp.lt.s32.totalorder %s16_s10, %s16_s10 }
   0x9   :  { %p132_p3 = scmp.ne.s32.totalorder %s16_s10, %s131_s18  ;;  %p137_p5 = scmp.lt.s32.totalorder %s131_s18, %s131_s18 }
   0xb   :  { %p138_p6 = por %p137_p5, %p136_p4 }
   0xd   :  { %p139_p7 = pnand %p138_p6, %p132_p3 }
   0xf   :  { %142 = shalt.err (!%p139_p7)
}
  0x10   :  { %18 = dma.hbm_to_vmem [thread:$0]  %s217_s0, 32, %s16_s10, [#allocation3]  }
  0x11   :  { %165 = dma.done.wait [#allocation3], 32  }
  0x12   :  { %166 = vsyncadd [#allocation3], 4294967264  ;;  %vm27_vm0 = vcmask 123904   ;;  %v24_v0 = vld [vmem:[#allocation2] sm:$0x3]  ;;  %v47_v5 = vlaneseq  ;;  %vm78_vm4 = vcmask 122880  }
  0x13   :  { %v28_v1 = vsel %vm27_vm0, %v24_v0, -inf  ;;  %v25_v9 = vld [vmem:[%s218_s1] sm:$0x1]  ;;  %v170_v38 = vmov 0.000125   ;;  %s171_s1 = smov [#allocation5]  }
  0x14   :  { %v29_v2 = vrot.slane %v28_v1, 4  ;;  %v48_v8 = vshrl.u32 %v47_v5, 7  ;;  %v26_v11 = vunpack.c.0.s8 %v25_v9  ;;  %v73_v40 = vand.u32 127, %v47_v5  ;;  %s101_s23 = sshll.u32 %s171_s1, 4  ;;  %s102_s23 = int_to_ptr.vmem [resolvable:$true] %s101_s23 }
  0x15   :  { %s143_s25 = scalar_lea.vmem %s102_s23, 128  ;;  %p148_p9 = scmp.lt.s32.totalorder %s102_s23, %s102_s23 }
  0x16   :  { %v30_v3 = vmax.f32 %v28_v1, %v29_v2  ;;  %v51_v13 = vsub.s32 0, %v48_v8  ;;  %vm62_vm2 = vcmp.eq.s32.totalorder %v26_v11, 1  ;;  %vm76_vm3 = vcmp.lt.s32.totalorder %v73_v40, 16  ;;  %p144_p8 = scmp.ne.s32.totalorder %s102_s23, %s143_s25  ;;  %p149_p10 = scmp.lt.s32.totalorder %s143_s25, %s143_s25 }
  0x17   :  { %v63_v39 = vsel %vm62_vm2, 0.00025, %v170_v38  ;;  %v90_v53 = vadd.s32 %v73_v40, %v48_v8 }
  0x18   :  { %v31_v4 = vrot.slane %v30_v3, 2  ;;  %v52_v15 = vrot.slane %v26_v11, %v51_v13  ;;  %p150_p11 = por %p149_p10, %p148_p9 }
  0x19   :  { %vm91_vm5 = vcmp.eq.s32.totalorder %v90_v53, 0 }
  0x1a   :  { %v32_v6 = vmax.f32 %v30_v3, %v31_v4  ;;  %vm53_vm1 = vcmp.eq.s32.totalorder %v48_v8, %v52_v15  ;;  %p151_p12 = pnand %p150_p11, %p144_p8 }
  0x1c   :  { %v33_v7 = vrot.slane %v32_v6, 1 }
  0x1e   :  { %v34_v10 = vmax.f32 %v32_v6, %v33_v7 }
  0x20   :  { %v35_v12 = vsub.f32 %v24_v0, %v34_v10 }
  0x22   :  { %v36_v14 = vmul.f32 1.442695, %v35_v12  ;;  %v54_v16 = vsel %vm53_vm1, %v35_v12, 0.0 }
  0x23   :  { %v55_v18 = vsel %vm27_vm0, %v54_v16, 0.0 }
  0x24   :  { %115 = vpow2.f32 %v36_v14  ;;  %v56_v21 = vrot.slane %v55_v18, 4 }
  0x26   :  { %v57_v24 = vadd.f32 %v56_v21, %v55_v18 }
  0x28   :  { %v58_v27 = vrot.slane %v57_v24, 2 }
  0x2a   :  { %v59_v29 = vadd.f32 %v58_v27, %v57_v24 }
  0x2c   :  { %v60_v30 = vrot.slane %v59_v29, 1 }
  0x2e   :  { %v116_v17 = vpop.eup %115  ;;  %v61_v31 = vadd.f32 %v60_v30, %v59_v29 }
  0x2f   :  { %v38_v19 = vsel %vm27_vm0, %v116_v17, 0.0 }
  0x30   :  { %v39_v20 = vrot.slane %v38_v19, 4 }
  0x32   :  { %v40_v22 = vadd.f32 %v39_v20, %v38_v19 }
  0x34   :  { %v41_v23 = vrot.slane %v40_v22, 2 }
  0x36   :  { %v42_v25 = vadd.f32 %v41_v23, %v40_v22 }
  0x38   :  { %v43_v26 = vrot.slane %v42_v25, 1 }
  0x3a   :  { %v44_v28 = vadd.f32 %v43_v26, %v42_v25 }
  0x3c   :  { %117 = vlog2.f32 %v44_v28 }
  0x46   :  { %v118_v32 = vpop.eup %117 }
  0x47   :  { %v46_v33 = vmul.f32 0.6931472, %v118_v32 }
  0x49   :  { %v64_v34 = vsub.f32 %v61_v31, %v46_v33 }
  0x4b   :  { %v65_v35 = vmul.f32 1.442695, %v64_v34 }
  0x4d   :  { %119 = vpow2.f32 %v65_v35 }
  0x57   :  { %v120_v36 = vpop.eup %119 }
  0x58   :  { %v67_v37 = vsub.f32 1.0, %v120_v36 }
  0x5a   :  { %v68_v41 = vmul.f32 %v67_v37, %v67_v37 }
  0x5c   :  { %v69_v42 = vmul.f32 %v68_v41, %v63_v39 }
  0x5e   :  { %v70_v43 = vmul.f32 %v69_v42, %v64_v34 }
  0x60   :  { %v77_v44 = vsel %vm76_vm3, %v70_v43, 0.0 }
  0x61   :  { %v79_v45 = vsel %vm78_vm4, %v77_v44, 0.0 }
  0x62   :  { %80 = vadd.xlane.f32.xlu0 %v79_v45 }
  0xef   :  { %v81_v46 = vpop.xlane.xlu0 %80 }
  0xf0   :  { %v82_v47 = vrot.slane %v81_v46, 4 }
  0xf2   :  { %v83_v48 = vadd.f32 %v82_v47, %v81_v46 }
  0xf4   :  { %v84_v49 = vrot.slane %v83_v48, 2 }
  0xf6   :  { %v85_v50 = vadd.f32 %v84_v49, %v83_v48 }
  0xf8   :  { %v86_v51 = vrot.slane %v85_v50, 1 }
  0xfa   :  { %v87_v52 = vadd.f32 %v86_v51, %v85_v50 }
  0xfc   :  { %110 = vpush %v87_v52 }
 0x12d   :  { %s111_s0 = spop %110 }
 0x12e   :  { %s89_s24 = ssub.f32 0.0, %s111_s0 }
 0x130   :  { %v92_v54 = vstv %s89_s24 }
 0x131   :  { %v93_v55 = vsel %vm91_vm5, %v92_v54, 0.0 }
 0x132   :  { %94 = vst [vmem:[#allocation5] sm:$0xff] %v93_v55 }
 0x133   :  { %154 = shalt.err (!%p151_p12)
}
 0x134   :  { %s155_s28 = scalar_lea.hbm %s219_s2, 128 }
 0x135   :  { %p156_p13 = scmp.ne.s32.totalorder %s219_s2, %s155_s28  ;;  %p159_p0 = scmp.lt.u32.totalorder %s155_s28, %s219_s2 }
 0x137   :  { %p161_p1 = pnand %p159_p0, %p156_p13 }
 0x139   :  { %164 = shalt.err (!%p161_p1)
}
 0x13a   :  { %104 = dma.vmem_to_hbm [thread:$0]  %s102_s23, 128, %s219_s2, [#allocation4]  }
 0x13b   :  { %167 = dma.done.wait [#allocation4], 128  }
 0x13c   :  { %168 = vsyncadd [#allocation4], 4294967168 }
 0x13d   :  { %108 = vsyncpa [#allocation3], 1 }
 0x13e   :  { %109 = vsyncpa [#allocation4], 1 }

</bundles_post_ra>
